<compile_context>
chip_gen: v7x
topology: tpu7x:2x2x1
jax: 0.10.0
libtpu: 0.0.40
codegen_flags: <defaults>
</compile_context>

<pallas_src>
import functools

import jax
import jax.numpy as jnp
from jax.experimental import pallas as pl
from jax.experimental.pallas import tpu as pltpu

LANE = 128
SUBLANE = 8


def _cdiv(a, b):
    return -(-a // b)


def _round_up(a, b):
    return _cdiv(a, b) * b


def _wbce_kernel(p_ref, t_ref, o_ref, acc_ref, *, binary_targets):
    ki = pl.program_id(2)

    @pl.when(ki == 0)
    def _init():
        acc_ref[...] = jnp.zeros_like(acc_ref)

    p = p_ref[...]                      # (B, 1, tile_r, 128) f32
    t = t_ref[...]                      # (B, 1, tile_r, 128) f32

    if binary_targets:
        # One EUP log per element — only valid for hard {0, 1} targets.
        log_term = jnp.maximum(jnp.log(jnp.where(t > 0.5, p, 1.0 - p)), -100.0)
        loss = -log_term
    else:
        # PyTorch BCE clamps each log term at -100 before combining.
        log_p = jnp.maximum(jnp.log(p), -100.0)
        log_1mp = jnp.maximum(jnp.log(1.0 - p), -100.0)
        loss = -(t * log_p + (1.0 - t) * log_1mp)

    # Pure-VPU partial reduction: fold the vreg-shaped (8, 128) groups elementwise
    # into the resident accumulator (no per-step XLU work, no per-step writeback).
    acc_ref[...] += loss.reshape(-1, SUBLANE, LANE).sum(axis=0)

    @pl.when(ki == pl.num_programs(2) - 1)
    def _finalize():
        o_ref[...] = acc_ref[...][None, None, :, :]


def weighted_bce_mc(prediction, target, class_weights, *,
                    tile_r=1024, num_parts=1, binary_targets=False):
    """prediction/target: (B, C, H, W) float in [0, 1]; class_weights: (C,)."""
    B, C, H, W = prediction.shape
    HW = H * W

    p = prediction.reshape(B, C, HW).astype(jnp.float32)
    t = target.reshape(B, C, HW).astype(jnp.float32)

    # ---- lane/sublane-dense tiling over each channel's spatial plane ----------
    rows = _cdiv(HW, LANE)                                # 128-wide rows per (b, c)
    tile_r = max(SUBLANE, _round_up(min(tile_r, _round_up(rows, SUBLANE)), SUBLANE))
    # Keep the double-buffered p+t working set <= ~24 MiB (v7x has only 64 MiB VMEM).
    max_tile_r = (24 * 1024 * 1024) // (2 * 2 * B * LANE * 4)
    tile_r = min(tile_r, max(SUBLANE, (max_tile_r // SUBLANE) * SUBLANE))

    blocks_needed = _cdiv(rows, tile_r)
    num_parts = max(1, min(num_parts, blocks_needed))     # optional extra parallel split
    blocks_per_part = _cdiv(blocks_needed, num_parts)
    rows_padded = num_parts * blocks_per_part * tile_r
    hw_padded = rows_padded * LANE

    if hw_padded > HW:
        pad = hw_padded - HW
        # p = t = 1 contributes exactly 0 loss on both code paths (no weight mask needed).
        p = jnp.pad(p, ((0, 0), (0, 0), (0, pad)), constant_values=1.0)
        t = jnp.pad(t, ((0, 0), (0, 0), (0, pad)), constant_values=1.0)

    p4 = p.reshape(B, C, rows_padded, LANE)
    t4 = t.reshape(B, C, rows_padded, LANE)

    block_bytes = 2 * B * tile_r * LANE * 4               # p + t per grid step
    vmem_limit = int(min(48 * 1024 * 1024, max(16 * 1024 * 1024, 4 * block_bytes)))

    bpp = blocks_per_part                                  # static int for index maps

    partials = pl.pallas_call(
        functools.partial(_wbce_kernel, binary_targets=binary_targets),
        out_shape=jax.ShapeDtypeStruct((C, num_parts, SUBLANE, LANE), jnp.float32),
        grid_spec=pltpu.PrefetchScalarGridSpec(
            num_scalar_prefetch=0,
            grid=(C, num_parts, blocks_per_part),
            in_specs=[
                pl.BlockSpec((B, 1, tile_r, LANE),
                             lambda c, pi, ki: (0, c, pi * bpp + ki, 0)),
                pl.BlockSpec((B, 1, tile_r, LANE),
                             lambda c, pi, ki: (0, c, pi * bpp + ki, 0)),
            ],
            out_specs=pl.BlockSpec((1, 1, SUBLANE, LANE),
                                   lambda c, pi, ki: (c, pi, 0, 0)),
            scratch_shapes=[pltpu.VMEM((SUBLANE, LANE), jnp.float32)],
        ),
        compiler_params=pltpu.CompilerParams(
            dimension_semantics=("parallel", "parallel", "arbitrary"),
            vmem_limit_bytes=vmem_limit,
        ),
    )(p4, t4)

    # Unweighted per-channel sums -> apply the (C,) class weights and the batch mean.
    per_channel = jnp.sum(partials, axis=(1, 2, 3))        # (C,)
    w = class_weights.astype(jnp.float32)
    return jnp.dot(per_channel, w) / B


def _reference(prediction, target, class_weights):
    B, C, H, W = prediction.shape
    w = jnp.broadcast_to(class_weights[:, None, None], (C, H, W))
    log_p = jnp.maximum(jnp.log(prediction), -100.0)
    log_1mp = jnp.maximum(jnp.log(1.0 - prediction), -100.0)
    loss = -w[None] * (target * log_p + (1.0 - target) * log_1mp)
    per_batch = jnp.sum(loss.reshape(B, -1), axis=1)
    return jnp.mean(per_batch)


if __name__ == "__main__":
    B, C, H, W = 2, 4, 16, 16

    key = jax.random.PRNGKey(0)
    k1, k2 = jax.random.split(key)

    # prediction must lie in (0, 1) — emulate a sigmoid output
    prediction = jax.nn.sigmoid(jax.random.normal(k1, (B, C, H, W), dtype=jnp.float32))
    # binary targets
    target = (jax.random.uniform(k2, (B, C, H, W)) > 0.5).astype(jnp.float32)
    # deterministic per-class weights (module __init__ takes a weight list of length C)
    class_weights = jnp.array([0.5, 1.0, 1.5, 2.0], dtype=jnp.float32)

    ref = _reference(prediction, target, class_weights)

    # general (soft-target capable) two-log path
    loss = weighted_bce_mc(prediction, target, class_weights)
    loss = jax.block_until_ready(loss)
    assert jnp.allclose(loss, ref, rtol=2e-5, atol=1e-2), (loss, ref)

    # fast single-log path (valid here because targets are exact {0, 1})
    loss_b = weighted_bce_mc(prediction, target, class_weights, binary_targets=True)
    loss_b = jax.block_until_ready(loss_b)
    assert jnp.allclose(loss_b, ref, rtol=2e-5, atol=1e-2), (loss_b, ref)

    # TODO(synk): the host-side numpy->FloatTensor->.cuda() weight transfer in the
    # original module is framework plumbing with no kernel-level equivalent.
    print("KERNEL_OK")
</pallas_src>

<mosaic_0001>
module attributes {stable_mosaic.version = 11 : i64} {
  func.func @_wbce_kernel(%arg0: i32, %arg1: i32, %arg2: i32, %arg3: memref<2x1x8x128xf32, #tpu.memory_space<vmem>>, %arg4: memref<2x1x8x128xf32, #tpu.memory_space<vmem>>, %arg5: memref<1x1x8x128xf32, #tpu.memory_space<vmem>>, %arg6: memref<8x128xf32, #tpu.memory_space<vmem>>) attributes {dimension_semantics = [#tpu.dimension_semantics<parallel>, #tpu.dimension_semantics<parallel>, #tpu.dimension_semantics<arbitrary>], iteration_bounds = array<i64: 4, 1, 1>, scalar_prefetch = 0 : i64, scratch_operands = 1 : i64, tpu.core_type = #tpu.core_type<tc>, window_params = [{transform_indices = @transform_0, window_bounds = array<i64: 2, 1, 8, 128>}, {transform_indices = @transform_1, window_bounds = array<i64: 2, 1, 8, 128>}, {transform_indices = @transform_2, window_bounds = array<i64: 1, 1, 8, 128>}]} {
    %c0_i32 = arith.constant 0 : i32
    %0 = arith.cmpi eq, %arg2, %c0_i32 : i32
    %1 = arith.extui %0 : i1 to i32
    %c0_i32_0 = arith.constant 0 : i32
    %2 = arith.cmpi ne, %1, %c0_i32_0 : i32
    scf.if %2 {
      %cst_19 = arith.constant 0.000000e+00 : f32
      %28 = vector.broadcast %cst_19 : f32 to vector<8x128xf32>
      %c0_20 = arith.constant 0 : index
      %c0_21 = arith.constant 0 : index
      %29 = vector.load %arg6[%c0_20, %c0_21] : memref<8x128xf32, #tpu.memory_space<vmem>>, vector<8x128xf32>
      tpu.vector_store %arg6[%c0_20, %c0_21], %28 {strides = array<i32>} : memref<8x128xf32, #tpu.memory_space<vmem>>, vector<8x128xf32>,
    } else {
    }
    %c0 = arith.constant 0 : index
    %c0_1 = arith.constant 0 : index
    %c0_2 = arith.constant 0 : index
    %c0_3 = arith.constant 0 : index
    %3 = vector.load %arg3[%c0, %c0_1, %c0_2, %c0_3] : memref<2x1x8x128xf32, #tpu.memory_space<vmem>>, vector<2x1x8x128xf32>
    %c0_4 = arith.constant 0 : index
    %c0_5 = arith.constant 0 : index
    %c0_6 = arith.constant 0 : index
    %c0_7 = arith.constant 0 : index
    %4 = vector.load %arg4[%c0_4, %c0_5, %c0_6, %c0_7] : memref<2x1x8x128xf32, #tpu.memory_space<vmem>>, vector<2x1x8x128xf32>
    %5 = math.log %3 : vector<2x1x8x128xf32>
    %cst = arith.constant -1.000000e+02 : f32
    %6 = vector.broadcast %cst : f32 to vector<2x1x8x128xf32>
    %7 = arith.maximumf %5, %6 : vector<2x1x8x128xf32>
    %cst_8 = arith.constant 1.000000e+00 : f32
    %8 = vector.broadcast %cst_8 : f32 to vector<2x1x8x128xf32>
    %9 = arith.subf %8, %3 : vector<2x1x8x128xf32>
    %10 = math.log %9 : vector<2x1x8x128xf32>
    %cst_9 = arith.constant -1.000000e+02 : f32
    %11 = vector.broadcast %cst_9 : f32 to vector<2x1x8x128xf32>
    %12 = arith.maximumf %10, %11 : vector<2x1x8x128xf32>
    %13 = arith.mulf %4, %7 : vector<2x1x8x128xf32>
    %cst_10 = arith.constant 1.000000e+00 : f32
    %14 = vector.broadcast %cst_10 : f32 to vector<2x1x8x128xf32>
    %15 = arith.subf %14, %4 : vector<2x1x8x128xf32>
    %16 = arith.mulf %15, %12 : vector<2x1x8x128xf32>
    %17 = arith.addf %13, %16 : vector<2x1x8x128xf32>
    %cst_11 = arith.constant 0.000000e+00 : f32
    %18 = vector.broadcast %cst_11 : f32 to vector<2x1x8x128xf32>
    %19 = arith.subf %18, %17 : vector<2x1x8x128xf32>
    %c0_12 = arith.constant 0 : index
    %c0_13 = arith.constant 0 : index
    %20 = vector.load %arg6[%c0_12, %c0_13] : memref<8x128xf32, #tpu.memory_space<vmem>>, vector<8x128xf32>
    %21 = vector.shape_cast %19 : vector<2x1x8x128xf32> to vector<2x8x128xf32>
    %cst_14 = arith.constant dense<0.000000e+00> : vector<8x128xf32>
    %22 = vector.multi_reduction <add>, %21, %cst_14 [0] : vector<2x8x128xf32> to vector<8x128xf32>
    %23 = arith.addf %20, %22 : vector<8x128xf32>
    %c0_15 = arith.constant 0 : index
    %c0_16 = arith.constant 0 : index
    %24 = vector.load %arg6[%c0_15, %c0_16] : memref<8x128xf32, #tpu.memory_space<vmem>>, vector<8x128xf32>
    tpu.vector_store %arg6[%c0_15, %c0_16], %23 {strides = array<i32>} : memref<8x128xf32, #tpu.memory_space<vmem>>, vector<8x128xf32>,
    %c0_i32_17 = arith.constant 0 : i32
    %25 = arith.cmpi eq, %arg2, %c0_i32_17 : i32
    %26 = arith.extui %25 : i1 to i32
    %c0_i32_18 = arith.constant 0 : i32
    %27 = arith.cmpi ne, %26, %c0_i32_18 : i32
    scf.if %27 {
      %c0_19 = arith.constant 0 : index
      %c0_20 = arith.constant 0 : index
      %28 = vector.load %arg6[%c0_19, %c0_20] : memref<8x128xf32, #tpu.memory_space<vmem>>, vector<8x128xf32>
      %29 = vector.shape_cast %28 : vector<8x128xf32> to vector<1x1x8x128xf32>
      %c0_21 = arith.constant 0 : index
      %c0_22 = arith.constant 0 : index
      %c0_23 = arith.constant 0 : index
      %c0_24 = arith.constant 0 : index
      %30 = vector.load %arg5[%c0_21, %c0_22, %c0_23, %c0_24] : memref<1x1x8x128xf32, #tpu.memory_space<vmem>>, vector<1x1x8x128xf32>
      tpu.vector_store %arg5[%c0_21, %c0_22, %c0_23, %c0_24], %29 {strides = array<i32>} : memref<1x1x8x128xf32, #tpu.memory_space<vmem>>, vector<1x1x8x128xf32>,
    } else {
    }
    return
  }
  func.func @transform_0(%arg0: i32, %arg1: i32, %arg2: i32) -> (i32, i32, i32, i32) {
    %c1_i32 = arith.constant 1 : i32
    %0 = arith.muli %arg1, %c1_i32 : i32
    %1 = arith.addi %0, %arg2 : i32
    %c0_i32 = arith.constant 0 : i32
    %c0_i32_0 = arith.constant 0 : i32
    %c0_i32_1 = arith.constant 0 : i32
    return %c0_i32, %arg0, %1, %c0_i32_0 : i32, i32, i32, i32
  }
  func.func @transform_1(%arg0: i32, %arg1: i32, %arg2: i32) -> (i32, i32, i32, i32) {
    %c1_i32 = arith.constant 1 : i32
    %0 = arith.muli %arg1, %c1_i32 : i32
    %1 = arith.addi %0, %arg2 : i32
    %c0_i32 = arith.constant 0 : i32
    %c0_i32_0 = arith.constant 0 : i32
    %c0_i32_1 = arith.constant 0 : i32
    return %c0_i32, %arg0, %1, %c0_i32_0 : i32, i32, i32, i32
  }
  func.func @transform_2(%arg0: i32, %arg1: i32, %arg2: i32) -> (i32, i32, i32, i32) {
    %c0_i32 = arith.constant 0 : i32
    %c0_i32_0 = arith.constant 0 : i32
    %c0_i32_1 = arith.constant 0 : i32
    return %arg0, %arg1, %c0_i32, %c0_i32_0 : i32, i32, i32, i32
  }
}

</mosaic_0001>

<bundles_post_ra>
// kernel: tpu_custom_call.1
= control target key start
LH: loop header
LB: loop body
LE: loop exit
PB: predicated region body
PF: predicated region fallthrough
CT: control target
= control target key end

     0   :  { %7 = vsyncpa [#allocation4], 0  ;;  %s895_s0 = inlined_call_operand.hbm [shape: f32[2,4,8,128], index: 0, kind: input, shape index: {}]   ;;  %s896_s1 = inlined_call_operand.hbm [shape: f32[2,4,8,128], index: 1, kind: input, shape index: {}]   ;;  %s897_s2 = inlined_call_operand.hbm [shape: f32[4,1,8,128], index: 2, kind: output, shape index: {}]  }
   0x1   :  { %9 = vsyncpa [#allocation4 + $0x1], 0 }
   0x2   :  { %10 = vsyncpa [#allocation7], 0 }
   0x3   :  { %12 = vsyncpa [#allocation7 + $0x1], 0 }
   0x4   :  { %13 = vsyncpa [#allocation5], 0 }
   0x5   :  { %15 = vsyncpa [#allocation5 + $0x1], 0  ;;  %s664_s9 = smov 0   ;;  %s666_s10 = smov 0  }
   0x6   :  { %s668_s11 = smov 0   ;;  %s670_s12 = smov 0  }
   0x7   :  { %s672_s13 = smov 0   ;;  %s674_s14 = smov 0  }
   0x8 LB: > { %s401_s15 = sadd.s32 4294967295, %s641_s14   ;;  %s402_s16 = sadd.s32 4294967294, %s641_s14   ;;  %s641_s14 = sphi %s674_s14, %s21_s14   ;;  %s637_s13 = sphi %s672_s13, %s913_s13   ;;  %s633_s12 = sphi %s670_s12, %s912_s12   ;;  %s629_s11 = sphi %s668_s11, %s911_s11   ;;  %s625_s10 = sphi %s666_s10, %s910_s10   ;;  %s621_s9 = sphi %s664_s9, %s909_s9  }
   0x9   : > { %s40_s17 = sadd.s32 1, %s637_s13  ;;  %s51_s18 = sadd.s32 1, %s629_s11 }
   0xa   : > { %p42_p0 = scmp.ge.s32.totalorder %s40_s17, 4  ;;  %p58_p1 = scmp.ne.s32.totalorder %s629_s11, %s625_s10 }
   0xb   : > { %p59_p2 = scmp.eq.s32.totalorder %s641_s14, 0  ;;  %p64_p3 = scmp.ne.s32.totalorder %s625_s10, %s621_s9 }
   0xc   : > { %s915_s17 = smov (%p42_p0, %s40_s17), 0  ;;  %p65_p5 = scmp.eq.s32.totalorder %s401_s15, 0 }
   0xd   : > { %p705_p4 = por %p59_p2, %p58_p1  ;;  %s46_s20 = ssub.s32 %s637_s13, %s915_s17 }
   0xe   : > { %p120_p6 = scmp.eq.s32.totalorder %s401_s15, 3  ;;  %p49_p7 = scmp.eq.s32.totalorder %s46_s20, 0 }
   0xf   : > { %p711_p8 = por %p65_p5, %p64_p3  ;;  %p126_p10 = scmp.eq.s32.totalorder %s402_s16, 3 }
  0x10   : > { %p715_p9 = por %p120_p6, %p58_p1  ;;  %p434_p12 = scmp.lt.s32.totalorder %s641_s14, 4 }
  0x11   : > { %s901_s21 = scalar_select %p711_p8, 1, 0 }
  0x12   : > { %s902_s22 = scalar_select %p715_p9, 1, 0 }
  0x13   : > { %s720_s23 = scalar_select %p49_p7, %s629_s11, %s51_s18  }
  0x14   : > { %p722_p11 = por %p126_p10, %p64_p3  ;;  %s728_s25 = sand.u32 1, %s629_s11  }
  0x15   : > { %s405_s26 = sshll.u32 %s728_s25, 4  ;;  %s406_s27 = sshll.u32 %s637_s13, 7 }
  0x16   : > { %s903_s24 = scalar_select %p722_p11, 1, 0 }
  0x17   : > { %s737_s30 = scalar_lea.hbm %s895_s0, %s406_s27  ;;  %s150_s3 = scalar_lea.vmem [#allocation3], %s405_s26 }
  0x18   : > { %s158_s4 = sshll.u32 %s150_s3, 4  ;;  %p745_p13 = pnand %p434_p12, %p705_p4  ;;  %s741_s4 = int_to_ptr.vmem [resolvable:$true] %s158_s4 }
  0x19   : > { %s147_s6 = scalar_lea.sflag [#allocation4], %s728_s25  ;;  %s495_s7 = scalar_lea.hbm %s737_s30, 256 }
  0x1a   : > { %p496_p0 = scmp.ne.s32.totalorder %s737_s30, %s495_s7  ;;  %p497_p1 = pneg %p745_p13 }
  0x1b   : > { %s500_s16 = scalar_lea.hbm %s895_s0, 1024  ;;  %p501_p4 = scmp.lt.u32.totalorder %s737_s30, %s895_s0 }
  0x1c   : > { %p498_p2 = pnand %p497_p1, %p496_p0  ;;  %p502_p5 = scmp.lt.u32.totalorder %s500_s16, %s495_s7 }
  0x1d   : > { %p504_p7 = scmp.lt.u32.totalorder %s495_s7, %s737_s30 }
  0x1e   : > { %p499_p3 = pneg %p498_p2  ;;  %p503_p6 = por %p502_p5, %p501_p4 }
  0x20   : > { %p505_p10 = por %p504_p7, %p503_p6 }
  0x22   : > { %p506_p12 = pnand %p505_p10, %p499_p3 }
  0x24   : > { %509 = shalt.err (!%p506_p12)
}
  0x25   : > { %s510_s20 = scalar_lea.vmem %s741_s4, 256  ;;  %s643_s28 = smov [#allocation3]  }
  0x26   : > { %p511_p0 = scmp.ne.s32.totalorder %s741_s4, %s510_s20  ;;  %s515_s29 = sshll.u32 %s643_s28, 4  ;;  %s516_s29 = int_to_ptr.vmem [resolvable:$false] %s515_s29 }
  0x27   : > { %s517_s3 = scalar_lea.vmem %s516_s29, 512  ;;  %p518_p9 = scmp.lt.s32.totalorder %s741_s4, %s516_s29 }
  0x28   : > { %p513_p2 = pnand %p511_p0, %p497_p1  ;;  %p519_p4 = scmp.lt.s32.totalorder %s517_s3, %s510_s20 }
  0x2a   : > { %p514_p11 = pneg %p513_p2  ;;  %p520_p5 = por %p519_p4, %p518_p9 }
  0x2c   : > { %p521_p6 = pnand %p520_p5, %p514_p11 }
  0x2e   : > { %524 = shalt.err (!%p521_p6)
}
  0x2f   : > { %s644_s7 = smov 512   ;;  %s645_s8 = smov 128  }
  0x30   : > { %s646_s15 = smov 8   ;;  %p409_p9 = scmp.ge.s32.totalorder %s641_s14, 1 }
  0x31   : > { %426 = dma.hbm_to_vmem [thread:$0]  (!%p745_p13), %s737_s30, 256, %s741_s4, %s147_s6, %s644_s7, %s645_s8, %s646_s15  }
  0x32   : > { %p188_p11 = scmp.lt.s32.totalorder %s641_s14, 5  ;;  %s791_s20 = scalar_lea.hbm %s896_s1, %s406_s27 }
  0x33   : > { %s172_s28 = scalar_lea.vmem [#allocation6], %s405_s26  ;;  %s169_s30 = scalar_lea.sflag [#allocation7], %s728_s25 }
  0x34   : > { %p782_p3 = pnand %p409_p9, %p188_p11  ;;  %s180_s29 = sshll.u32 %s172_s28, 4  ;;  %s795_s29 = int_to_ptr.vmem [resolvable:$true] %s180_s29 }
  0x35   : > { %s525_s4 = scalar_lea.hbm %s791_s20, 256  ;;  %s530_s27 = scalar_lea.hbm %s896_s1, 1024 }
  0x36   : > { %p526_p7 = scmp.ne.s32.totalorder %s791_s20, %s525_s4  ;;  %p531_p0 = scmp.lt.u32.totalorder %s791_s20, %s896_s1 }
  0x37   : > { %p532_p2 = scmp.lt.u32.totalorder %s530_s27, %s525_s4  ;;  %p534_p5 = scmp.lt.u32.totalorder %s525_s4, %s791_s20 }
  0x38   : > { %p528_p10 = pnand %p526_p7, %p497_p1 }
  0x39   : > { %p533_p4 = por %p532_p2, %p531_p0 }
  0x3a   : > { %p529_p12 = pneg %p528_p10 }
  0x3b   : > { %p535_p6 = por %p534_p5, %p533_p4 }
  0x3d   : > { %p536_p9 = pnand %p535_p6, %p529_p12 }
  0x3f   : > { %539 = shalt.err (!%p536_p9)
}
  0x40   : > { %s540_s26 = scalar_lea.vmem %s795_s29, 256  ;;  %s647_s28 = smov [#allocation6]  }
  0x41   : > { %p541_p11 = scmp.ne.s32.totalorder %s795_s29, %s540_s26  ;;  %s545_s6 = sshll.u32 %s647_s28, 4  ;;  %s546_s6 = int_to_ptr.vmem [resolvable:$false] %s545_s6 }
  0x42   : > { %s547_s3 = scalar_lea.vmem %s546_s6, 512  ;;  %p548_p8 = scmp.lt.s32.totalorder %s795_s29, %s546_s6 }
  0x43   : > { %p543_p7 = pnand %p541_p11, %p497_p1  ;;  %p549_p0 = scmp.lt.s32.totalorder %s547_s3, %s540_s26 }
  0x45   : > { %p544_p10 = pneg %p543_p7  ;;  %p550_p2 = por %p549_p0, %p548_p8 }
  0x47   : > { %p551_p4 = pnand %p550_p2, %p544_p10 }
  0x49   : > { %554 = shalt.err (!%p551_p4)
}
  0x4a   : > { %429 = dma.hbm_to_vmem [thread:$0]  (!%p745_p13), %s791_s20, 256, %s795_s29, %s169_s30, %s644_s7, %s645_s8, %s646_s15  }
  0x4b   : > { %192 = sbr.rel (%p782_p3) target bundleno = 126 (0x7e), region = 28  ;;  %s829_s4 = sand.u32 (!%p782_p3), 1, %s625_s10  }
  0x4c   : > { %s410_s27 = sshll.u32 (!%p782_p3), %s829_s4, 4  ;;  %s195_s18 = scalar_lea.sflag (!%p782_p3), [#allocation4], %s829_s4 }
  0x4d   : > { %s198_s5 = scalar_lea.vmem (!%p782_p3), [#allocation3], %s410_s27  ;;  %p906_p8 = scmp.ne.s32.totalorder (!%p782_p3), %s901_s21, 0 }
  0x52   : > { %608 = dma.done.wait (%p906_p8), %s195_s18, 256  }
  0x53   : > { %610 = vsyncadd (%p906_p8), %s195_s18, 4294967040  ;;  %s204_s25 = scalar_lea.sflag [#allocation7], %s829_s4  ;;  %s207_s7 = scalar_lea.vmem [#allocation6], %s410_s27 }
  0x54   : > { %612 = dma.done.wait (%p906_p8), %s204_s25, 256  }
  0x55   : > { %614 = vsyncadd (%p906_p8), %s204_s25, 4294967040  ;;  %v240_v0 = vld [vmem:[%s198_s5] sm:$0xff]  ;;  %v241_v1 = vld [vmem:[%s198_s5 + $0x8] sm:$0xff]  ;;  %s412_s21 = sshll.u32 %s829_s4, 3  ;;  %s414_s16 = sshll.u32 %s633_s12, 7 }
  0x56   : > { %487 = vlog2.f32 %v240_v0  ;;  %v250_v2 = vsub.f32 1.0, %v240_v0  ;;  %v251_v3 = vsub.f32 1.0, %v241_v1  ;;  %v242_v5 = vld [vmem:[%s207_s7] sm:$0xff]  ;;  %v243_v7 = vld [vmem:[%s207_s7 + $0x8] sm:$0xff]  ;;  %s232_s8 = scalar_lea.vmem [#allocation8], %s412_s21  ;;  %s849_s30 = scalar_lea.hbm %s897_s2, %s414_s16 }
  0x57   : > { %489 = vlog2.f32 %v241_v1  ;;  %v260_v14 = vsub.f32 1.0, %v242_v5  ;;  %v261_v17 = vsub.f32 1.0, %v243_v7  ;;  %s292_s15 = sshll.u32 %s232_s8, 4  ;;  %s278_s19 = scalar_lea.sflag [#allocation5], %s829_s4  ;;  %s844_s15 = int_to_ptr.vmem [resolvable:$true] %s292_s15 }
  0x58   : > { %491 = vlog2.f32 %v250_v2  ;;  %s555_s26 = scalar_lea.vmem %s844_s15, 128  ;;  %p907_p1 = scmp.ne.s32.totalorder %s902_s22, 0 }
  0x59   : > { %493 = vlog2.f32 %v251_v3  ;;  %p556_p13 = scmp.ne.s32.totalorder %s844_s15, %s555_s26  ;;  %s648_s12 = smov [#allocation8]  }
  0x5a   : > { %s559_s28 = sshll.u32 %s648_s12, 4  ;;  %s560_s28 = int_to_ptr.vmem [resolvable:$false] %s559_s28 }
  0x5b   : > { %p557_p3 = pnand %p556_p13, %p907_p1  ;;  %s561_s6 = scalar_lea.vmem %s560_s28, 256 }
  0x5c   : > { %p562_p5 = scmp.lt.s32.totalorder %s844_s15, %s560_s28  ;;  %p563_p6 = scmp.lt.s32.totalorder %s561_s6, %s555_s26 }
  0x5d   : > { %p558_p12 = pneg %p557_p3 }
  0x5e   : > { %p564_p9 = por %p563_p6, %p562_p5 }
  0x60   : > { %v488_v4 = vpop.eup %487  ;;  %p565_p11 = pnand %p564_p9, %p558_p12 }
  0x61   : > { %v490_v6 = vpop.eup %489  ;;  %v245_v8 = vmul.f32 0.6931472, %v488_v4 }
  0x62   : > { %v492_v9 = vpop.eup %491  ;;  %v247_v10 = vmul.f32 0.6931472, %v490_v6 }
  0x63   : > { %v494_v11 = vpop.eup %493  ;;  %v248_v12 = vmax.f32 %v245_v8, -100.0  ;;  %v253_v13 = vmul.f32 0.6931472, %v492_v9 }
  0x64   : > { %v249_v15 = vmax.f32 %v247_v10, -100.0  ;;  %v255_v16 = vmul.f32 0.6931472, %v494_v11 }
  0x65   : > { %v256_v18 = vmax.f32 %v253_v13, -100.0  ;;  %v258_v19 = vmul.f32 %v248_v12, %v242_v5 }
  0x66   : > { %v257_v20 = vmax.f32 %v255_v16, -100.0  ;;  %v259_v21 = vmul.f32 %v249_v15, %v243_v7 }
  0x67   : > { %v262_v22 = vmul.f32 %v260_v14, %v256_v18 }
  0x68   : > { %v263_v23 = vmul.f32 %v261_v17, %v257_v20 }
  0x69   : > { %v264_v24 = vadd.f32 %v262_v22, %v258_v19 }
  0x6a   : > { %v265_v25 = vadd.f32 %v263_v23, %v259_v21 }
  0x6b   : > { %v266_v26 = vsub.f32 0.0, %v264_v24 }
  0x6c   : > { %v267_v27 = vsub.f32 0.0, %v265_v25 }
  0x6e   : > { %v269_v28 = vadd.f32 %v267_v27, %v266_v26 }
  0x70   : > { %276 = vst [vmem:[%s232_s8] sm:$0xff] %v269_v28 }
  0x71   : > { %568 = shalt.err (!%p565_p11)
}
  0x72   : > { %s569_s3 = scalar_lea.hbm %s849_s30, 128  ;;  %s573_s18 = scalar_lea.hbm %s897_s2, 512 }
  0x73   : > { %p570_p7 = scmp.ne.s32.totalorder %s849_s30, %s569_s3  ;;  %p574_p2 = scmp.lt.u32.totalorder %s849_s30, %s897_s2 }
  0x74   : > { %p575_p4 = scmp.lt.u32.totalorder %s573_s18, %s569_s3  ;;  %p577_p13 = scmp.lt.u32.totalorder %s569_s3, %s849_s30 }
  0x75   : > { %p571_p10 = pnand %p570_p7, %p907_p1 }
  0x76   : > { %p576_p8 = por %p575_p4, %p574_p2 }
  0x77   : > { %p572_p0 = pneg %p571_p10 }
  0x78   : > { %p578_p3 = por %p577_p13, %p576_p8 }
  0x7a   : > { %p579_p12 = pnand %p578_p3, %p572_p0 }
  0x7c   : > { %582 = shalt.err (!%p579_p12)
}
  0x7d   : > { %421 = dma.vmem_to_hbm [thread:$0]  (%p907_p1), %s844_s15, 128, %s849_s30, %s278_s19  }
  0x7e PF: > { %p435_p5 = scmp.ge.s32.totalorder %s641_s14, 2  ;;  %s304_s7 = sand.u32 1, %s621_s9  }
  0x7f   : > { %p908_p6 = scmp.ne.s32.totalorder %s903_s24, 0  ;;  %s305_s21 = scalar_lea.sflag [#allocation5], %s304_s7 }
  0x81   : > { %p431_p9 = pnand %p435_p5, %p908_p6 }
  0x83   : > { %616 = dma.done.wait (!%p431_p9), %s305_s21, 128  }
  0x84   : > { %618 = vsyncadd (!%p431_p9), %s305_s21, 4294967168  ;;  %s21_s14 = sadd.s32 1, %s641_s14   ;;  %s909_s9 = smov %s625_s10 }
  0x85   : > { %p18_p11 = scmp.ge.s32.totalorder %s21_s14, 6   ;;  %s910_s10 = smov %s629_s11 }
  0x86   : > { %s911_s11 = smov %s720_s23  ;;  %s912_s12 = smov %s637_s13 }
  0x87   : > { %s913_s13 = smov %s915_s17  ;;  %20 = sbr.rel (!%p18_p11) target bundleno = 8 (0x8), region = 94 }
  0x8e   :  { %310 = vsyncpa [#allocation4], 1 }
  0x8f   :  { %312 = vsyncpa [#allocation4 + $0x1], 1 }
  0x90   :  { %313 = vsyncpa [#allocation7], 1 }
  0x91   :  { %315 = vsyncpa [#allocation7 + $0x1], 1 }
  0x92   :  { %316 = vsyncpa [#allocation5], 1 }
  0x93   :  { %318 = vsyncpa [#allocation5 + $0x1], 1 }

</bundles_post_ra>
